<compile_context>
chip_gen: v7x
topology: tpu7x:2x2x1
jax: 0.10.0
libtpu: 0.0.40
codegen_flags: <defaults>
</compile_context>

<pallas_src>
import functools
import math

import jax
import jax.numpy as jnp
from jax.experimental import pallas as pl
from jax.experimental.pallas import tpu as pltpu


def _critic_kernel(x_ref, w1_ref, b1_ref, w2_ref, b2_ref, w3_ref, b3_ref, out_ref,
                   *, tanh_dtype, layer1_on_vpu):
    """One grid step = one (TB, obs_dim) batch tile. Weights/biases have constant
    index_maps, so they stay VMEM-resident across grid steps (no re-DMA)."""
    mm_dtype = w1_ref.dtype  # bf16 if the weights were pre-cast (MXU fast path)

    # ---- Layer 1: Linear(obs_dim -> 256) -------------------------------------------
    if layer1_on_vpu:
        # K = obs_dim is tiny: broadcast-FMA on the VPU instead of burning a full MXU
        # pass. Only worth enabling if the MXU slot is the measured bottleneck.
        xf = x_ref[...].astype(jnp.float32)
        w1 = w1_ref[...].astype(jnp.float32)
        h1 = jnp.zeros((xf.shape[0], w1.shape[1]), jnp.float32)
        for k in range(xf.shape[1]):                 # static unroll over obs features
            h1 = h1 + xf[:, k:k + 1] * w1[k:k + 1, :]
        h1 = h1 + b1_ref[...]
    else:
        x = x_ref[...].astype(mm_dtype)              # in-kernel cast: rides idle VALU slots
        h1 = jnp.dot(x, w1_ref[...], preferred_element_type=jnp.float32) + b1_ref[...]
    h1 = jnp.tanh(h1.astype(tanh_dtype))

    # ---- Layer 2: Linear(256 -> 256) -----------------------------------------------
    h2 = jnp.dot(h1.astype(mm_dtype), w2_ref[...],
                 preferred_element_type=jnp.float32) + b2_ref[...]
    h2 = jnp.tanh(h2.astype(tanh_dtype)).astype(jnp.float32)

    # ---- Layer 3: Linear(256 -> 1) --------------------------------------------------
    # A [TB,256]@[256,1] matmul would use a single MXU output column; do it on the VPU
    # (elementwise mul + lane reduction) and store lane-dense as a (1, TB) row.
    v = jnp.sum(h2 * w3_ref[...], axis=-1)           # (TB,)
    out_ref[...] = (v[None, :] + b3_ref[...]).astype(out_ref.dtype)


def _round_up(n, m):
    return ((n + m - 1) // m) * m


def _pick_block_b(batch, block_b):
    """Batch-tile selection: multiple of 128 (lane-dense output stores, sublane-aligned
    rows), no wider than the batch needs, and >=2 grid steps when the batch allows
    (keeps both v7x TensorCores fed via the "parallel" grid axis)."""
    bb = max(128, (block_b // 128) * 128)
    bb = min(bb, _round_up(batch, 128))
    if batch > 128 and pl.cdiv(batch, bb) < 2:
        bb = max(128, _round_up(pl.cdiv(batch, 2), 128))
    return bb


def cast_params_bf16(params):
    """Pre-cast the big matmul weights to bf16 ONCE (bf16 MXU operands are the fast path
    on v5e/v6e/v7x). Biases, the 256->1 row and all accumulation stay f32."""
    w1, b1, w2, b2, w3, b3 = params
    return (w1.astype(jnp.bfloat16), b1, w2.astype(jnp.bfloat16), b2, w3, b3)


def recommended_flags():
    """Per-generation defaults: bf16 tanh only where the EUP is bf16-capable."""
    kind = jax.devices()[0].device_kind.lower()
    return {"bf16_tanh": "v5" not in kind}           # v5e VPU/EUP have no bf16


@functools.partial(jax.jit, static_argnames=("block_b", "bf16_tanh", "layer1_on_vpu"))
def critic_forward(x, params, *, block_b=512, bf16_tanh=False, layer1_on_vpu=False):
    """x: [B, obs_dim] f32 -> [B] f32 values (== Critic.forward(x).squeeze(-1)).

    Pass `cast_params_bf16(params)` for the bf16 MXU-operand fast path (accumulation
    stays f32 inside the kernel)."""
    w1, b1, w2, b2, w3, b3 = params
    B, obs_dim = x.shape
    hidden = w1.shape[1]

    bb = _pick_block_b(B, block_b)
    grid = (pl.cdiv(B, bb),)                         # ragged last block masked by Pallas
    tanh_dtype = jnp.bfloat16 if bf16_tanh else jnp.float32

    kernel = functools.partial(_critic_kernel, tanh_dtype=tanh_dtype,
                               layer1_on_vpu=layer1_on_vpu)

    cost = pl.CostEstimate(
        flops=2 * B * (obs_dim * hidden + hidden * hidden + hidden),
        transcendentals=2 * B * hidden,
        bytes_accessed=(x.size * x.dtype.itemsize + B * 4
                        + sum(int(p.size) * p.dtype.itemsize for p in params)),
    )

    out = pl.pallas_call(
        kernel,
        out_shape=jax.ShapeDtypeStruct((1, B), jnp.float32),
        grid_spec=pl.GridSpec(
            grid=grid,
            in_specs=[
                pl.BlockSpec((bb, obs_dim), lambda i: (i, 0)),   # x: tiled over batch
                pl.BlockSpec(w1.shape, lambda i: (0, 0)),        # weights/biases resident
                pl.BlockSpec(b1.shape, lambda i: (0, 0)),
                pl.BlockSpec(w2.shape, lambda i: (0, 0)),
                pl.BlockSpec(b2.shape, lambda i: (0, 0)),
                pl.BlockSpec(w3.shape, lambda i: (0, 0)),
                pl.BlockSpec(b3.shape, lambda i: (0, 0)),
            ],
            out_specs=pl.BlockSpec((1, bb), lambda i: (0, i)),   # lane-dense output row
        ),
        compiler_params=pltpu.CompilerParams(
            dimension_semantics=("parallel",),        # independent batch tiles (2 TCs v7x)
        ),
        cost_estimate=cost,
    )(x, w1, b1, w2, b2, w3, b3)

    return out[0]                                     # squeeze(-1)


def orthogonal_init(key, out_features, in_features, gain):
    """Deterministic orthogonal init (mimics nn.init.orthogonal_ + gain)."""
    rows, cols = out_features, in_features
    flat = jax.random.normal(key, (max(rows, cols), min(rows, cols)), dtype=jnp.float32)
    q, r = jnp.linalg.qr(flat)
    q = q * jnp.sign(jnp.diagonal(r))[None, :]        # sign fix like PyTorch
    if rows < cols:
        q = q.T
    w = gain * q[:rows, :cols]                        # PyTorch layout: [out, in]
    return w.T                                        # kernel layout: [in, out]


def make_critic_params(obs_dim, hidden=256):
    gain = math.sqrt(2.0)
    k1, k2, k3 = jax.random.split(jax.random.PRNGKey(0), 3)
    w1 = orthogonal_init(k1, hidden, obs_dim, gain)   # [obs_dim, 256]
    b1 = jnp.zeros((1, hidden), jnp.float32)
    w2 = orthogonal_init(k2, hidden, hidden, gain)    # [256, 256]
    b2 = jnp.zeros((1, hidden), jnp.float32)
    w3 = orthogonal_init(k3, 1, hidden, gain).T       # stored as [1, 256] row (VPU path)
    b3 = jnp.zeros((1, 1), jnp.float32)
    return (w1, b1, w2, b2, w3, b3)


def _reference(x, params):
    w1, b1, w2, b2, w3, b3 = params
    h = jnp.tanh(x @ w1 + b1)
    h = jnp.tanh(h @ w2 + b2)
    return (h @ w3.T + b3)[:, 0]


if __name__ == "__main__":
    obs_dim = 8      # LunarLanderContinuous observation dim
    batch = 8        # small demo batch (single 128-row tile, masked partial block)

    params = make_critic_params(obs_dim)
    x = jax.random.normal(jax.random.PRNGKey(0), (batch, obs_dim), dtype=jnp.float32)
    ref = _reference(x, params)

    # f32 path: exact semantics of the PyTorch module.
    values = critic_forward(x, params)
    jax.block_until_ready(values)
    assert values.shape == (batch,)
    assert jnp.allclose(values, ref, atol=1e-5, rtol=1e-5)

    # Ragged multi-tile batch: 2 parallel grid steps, resident weights, no wrapper pad.
    xb = jax.random.normal(jax.random.PRNGKey(1), (600, obs_dim), dtype=jnp.float32)
    rb = _reference(xb, params)
    vb = critic_forward(xb, params, block_b=512)
    jax.block_until_ready(vb)
    assert vb.shape == (600,)
    assert jnp.allclose(vb, rb, atol=1e-5, rtol=1e-5)

    # Layer-1-on-VPU variant (enable in production only if the MXU slot is saturated).
    vv = critic_forward(xb, params, block_b=512, layer1_on_vpu=True)
    jax.block_until_ready(vv)
    assert jnp.allclose(vv, rb, atol=1e-4, rtol=1e-4)

    # bf16 fast path: weights pre-cast ONCE, x cast inside the kernel, bf16 tanh where
    # the EUP supports it; accumulation stays f32 -> small deviation only.
    params_bf16 = cast_params_bf16(params)
    flags = recommended_flags()
    vfast = critic_forward(xb, params_bf16, block_b=512, bf16_tanh=flags["bf16_tanh"])
    jax.block_until_ready(vfast)
    assert jnp.allclose(vfast, rb, atol=1e-1, rtol=1e-1)

    print("KERNEL_OK")
</pallas_src>

<mosaic_0001>
module attributes {stable_mosaic.version = 11 : i64} {
  func.func @_critic_kernel(%arg0: i32, %arg1: memref<128x8xf32, #tpu.memory_space<vmem>>, %arg2: memref<8x256xf32, #tpu.memory_space<vmem>>, %arg3: memref<1x256xf32, #tpu.memory_space<vmem>>, %arg4: memref<256x256xf32, #tpu.memory_space<vmem>>, %arg5: memref<1x256xf32, #tpu.memory_space<vmem>>, %arg6: memref<1x256xf32, #tpu.memory_space<vmem>>, %arg7: memref<1x1xf32, #tpu.memory_space<vmem>>, %arg8: memref<1x128xf32, #tpu.memory_space<vmem>>) attributes {dimension_semantics = [#tpu.dimension_semantics<parallel>], iteration_bounds = array<i64: 1>, scalar_prefetch = 0 : i64, scratch_operands = 0 : i64, tpu.core_type = #tpu.core_type<tc>, window_params = [{transform_indices = @transform_0, window_bounds = array<i64: 128, 8>}, {pipeline_mode = #tpu.pipeline_mode<synchronous>, transform_indices = @transform_1, window_bounds = array<i64: 8, 256>}, {pipeline_mode = #tpu.pipeline_mode<synchronous>, transform_indices = @transform_2, window_bounds = array<i64: 1, 256>}, {pipeline_mode = #tpu.pipeline_mode<synchronous>, transform_indices = @transform_3, window_bounds = array<i64: 256, 256>}, {pipeline_mode = #tpu.pipeline_mode<synchronous>, transform_indices = @transform_4, window_bounds = array<i64: 1, 256>}, {pipeline_mode = #tpu.pipeline_mode<synchronous>, transform_indices = @transform_5, window_bounds = array<i64: 1, 256>}, {pipeline_mode = #tpu.pipeline_mode<synchronous>, transform_indices = @transform_6, window_bounds = array<i64: 1, 1>}, {transform_indices = @transform_7, window_bounds = array<i64: 1, 128>}]} {
    %c0 = arith.constant 0 : index
    %c0_0 = arith.constant 0 : index
    %0 = vector.load %arg1[%c0, %c0_0] : memref<128x8xf32, #tpu.memory_space<vmem>>, vector<128x8xf32>
    %c0_1 = arith.constant 0 : index
    %c0_2 = arith.constant 0 : index
    %1 = vector.load %arg2[%c0_1, %c0_2] : memref<8x256xf32, #tpu.memory_space<vmem>>, vector<8x256xf32>
    %cst = arith.constant dense<0.000000e+00> : vector<128x256xf32>
    %2 = tpu.matmul %0, %1, %cst {dimension_numbers = #tpu.dot_dimension_numbers<[1], [0], [0], [1], [0, 0, 1, 1], [], []>} : vector<128x8xf32>, vector<8x256xf32>, vector<128x256xf32> -> vector<128x256xf32>
    %c0_3 = arith.constant 0 : index
    %c0_4 = arith.constant 0 : index
    %3 = vector.load %arg3[%c0_3, %c0_4] : memref<1x256xf32, #tpu.memory_space<vmem>>, vector<1x256xf32>
    %4 = vector.broadcast %3 : vector<1x256xf32> to vector<128x256xf32>
    %5 = arith.addf %2, %4 : vector<128x256xf32>
    %6 = math.tanh %5 : vector<128x256xf32>
    %c0_5 = arith.constant 0 : index
    %c0_6 = arith.constant 0 : index
    %7 = vector.load %arg4[%c0_5, %c0_6] : memref<256x256xf32, #tpu.memory_space<vmem>>, vector<256x256xf32>
    %cst_7 = arith.constant dense<0.000000e+00> : vector<128x256xf32>
    %8 = tpu.matmul %6, %7, %cst_7 {dimension_numbers = #tpu.dot_dimension_numbers<[1], [0], [0], [1], [0, 0, 1, 1], [], []>} : vector<128x256xf32>, vector<256x256xf32>, vector<128x256xf32> -> vector<128x256xf32>
    %c0_8 = arith.constant 0 : index
    %c0_9 = arith.constant 0 : index
    %9 = vector.load %arg5[%c0_8, %c0_9] : memref<1x256xf32, #tpu.memory_space<vmem>>, vector<1x256xf32>
    %10 = vector.broadcast %9 : vector<1x256xf32> to vector<128x256xf32>
    %11 = arith.addf %8, %10 : vector<128x256xf32>
    %12 = math.tanh %11 : vector<128x256xf32>
    %c0_10 = arith.constant 0 : index
    %c0_11 = arith.constant 0 : index
    %13 = vector.load %arg6[%c0_10, %c0_11] : memref<1x256xf32, #tpu.memory_space<vmem>>, vector<1x256xf32>
    %14 = vector.broadcast %13 : vector<1x256xf32> to vector<128x256xf32>
    %15 = arith.mulf %12, %14 : vector<128x256xf32>
    %cst_12 = arith.constant dense<0.000000e+00> : vector<128xf32>
    %16 = vector.multi_reduction <add>, %15, %cst_12 [1] : vector<128x256xf32> to vector<128xf32>
    %17 = vector.shape_cast %16 : vector<128xf32> to vector<1x128xf32>
    %c0_13 = arith.constant 0 : index
    %c0_14 = arith.constant 0 : index
    %18 = vector.load %arg7[%c0_13, %c0_14] : memref<1x1xf32, #tpu.memory_space<vmem>>, vector<1x1xf32>
    %19 = vector.broadcast %18 : vector<1x1xf32> to vector<1x128xf32>
    %20 = arith.addf %17, %19 : vector<1x128xf32>
    %c0_15 = arith.constant 0 : index
    %c0_16 = arith.constant 0 : index
    %21 = vector.load %arg8[%c0_15, %c0_16] : memref<1x128xf32, #tpu.memory_space<vmem>>, vector<1x128xf32>
    tpu.vector_store %arg8[%c0_15, %c0_16], %20 {strides = array<i32>} : memref<1x128xf32, #tpu.memory_space<vmem>>, vector<1x128xf32>,
    return
  }
  func.func @transform_0(%arg0: i32) -> (i32, i32) {
    %c0_i32 = arith.constant 0 : i32
    %c0_i32_0 = arith.constant 0 : i32
    return %arg0, %c0_i32 : i32, i32
  }
  func.func @transform_1(%arg0: i32) -> (i32, i32) {
    %c0_i32 = arith.constant 0 : i32
    %c0_i32_0 = arith.constant 0 : i32
    %c0_i32_1 = arith.constant 0 : i32
    return %c0_i32, %c0_i32_0 : i32, i32
  }
  func.func @transform_2(%arg0: i32) -> (i32, i32) {
    %c0_i32 = arith.constant 0 : i32
    %c0_i32_0 = arith.constant 0 : i32
    %c0_i32_1 = arith.constant 0 : i32
    return %c0_i32, %c0_i32_0 : i32, i32
  }
  func.func @transform_3(%arg0: i32) -> (i32, i32) {
    %c0_i32 = arith.constant 0 : i32
    %c0_i32_0 = arith.constant 0 : i32
    %c0_i32_1 = arith.constant 0 : i32
    return %c0_i32, %c0_i32_0 : i32, i32
  }
  func.func @transform_4(%arg0: i32) -> (i32, i32) {
    %c0_i32 = arith.constant 0 : i32
    %c0_i32_0 = arith.constant 0 : i32
    %c0_i32_1 = arith.constant 0 : i32
    return %c0_i32, %c0_i32_0 : i32, i32
  }
  func.func @transform_5(%arg0: i32) -> (i32, i32) {
    %c0_i32 = arith.constant 0 : i32
    %c0_i32_0 = arith.constant 0 : i32
    %c0_i32_1 = arith.constant 0 : i32
    return %c0_i32, %c0_i32_0 : i32, i32
  }
  func.func @transform_6(%arg0: i32) -> (i32, i32) {
    %c0_i32 = arith.constant 0 : i32
    %c0_i32_0 = arith.constant 0 : i32
    %c0_i32_1 = arith.constant 0 : i32
    return %c0_i32, %c0_i32_0 : i32, i32
  }
  func.func @transform_7(%arg0: i32) -> (i32, i32) {
    %c0_i32 = arith.constant 0 : i32
    %c0_i32_0 = arith.constant 0 : i32
    return %c0_i32, %arg0 : i32, i32
  }
}

</mosaic_0001>

<bundles_post_ra>
// kernel: critic_forward.1
= control target key start
LH: loop header
LB: loop body
LE: loop exit
PB: predicated region body
PF: predicated region fallthrough
CT: control target
= control target key end

     0   :  { %s1548_s0 = inlined_call_operand.hbm [shape: f32[8,8], index: 0, kind: input, shape index: {}]   ;;  %s1549_s1 = inlined_call_operand.hbm [shape: f32[8,256], index: 1, kind: input, shape index: {}]   ;;  %s1550_s2 = inlined_call_operand.vmem [shape: f32[1,256], index: 2, kind: input, shape index: {}]   ;;  %s1551_s3 = inlined_call_operand.hbm [shape: f32[256,256], index: 3, kind: input, shape index: {}]   ;;  %s1552_s4 = inlined_call_operand.vmem [shape: f32[1,256], index: 4, kind: input, shape index: {}]   ;;  %s1553_s5 = inlined_call_operand.vmem [shape: f32[1,256], index: 5, kind: input, shape index: {}]   ;;  %s1554_s6 = inlined_call_operand.<no memory space> [shape: f32[1,1], index: 6, kind: input, shape index: {}]   ;;  %s1555_s7 = inlined_call_operand.hbm [shape: f32[1,8], index: 7, kind: output, shape index: {}]  }
   0x1   :  { %v12_v0 = vstv %s1554_s6 }
   0x2   :  { %13 = vst [vmem:[#allocation2] sm:$0x1] %v12_v0 }
   0x3   :  { %14 = vsyncpa [#allocation4], 0 }
   0x4   :  { %15 = vsyncpa [#allocation7], 0 }
   0x5   :  { %16 = vsyncpa [#allocation5], 0 }
   0x6   :  { %21 = vsyncadd [#allocation4], 1920  ;;  %s1218_s26 = smov [#allocation6]   ;;  %s1219_s28 = smov [#allocation3]  }
   0x7   :  { %s35_s27 = sshll.u32 %s1218_s26, 4  ;;  %s22_s29 = sshll.u32 %s1219_s28, 4  ;;  %s36_s27 = int_to_ptr.vmem [resolvable:$true] %s35_s27  ;;  %s1271_s29 = int_to_ptr.vmem [resolvable:$true] %s22_s29 }
   0x8   :  { %s1124_s9 = scalar_lea.hbm %s1549_s1, 256 }
   0x9   :  { %p1125_p0 = scmp.ne.s32.totalorder %s1549_s1, %s1124_s9  ;;  %p1128_p1 = scmp.lt.u32.totalorder %s1124_s9, %s1549_s1 }
   0xb   :  { %p1130_p2 = pnand %p1128_p1, %p1125_p0 }
   0xd   :  { %1133 = shalt.err (!%p1130_p2)
}
   0xe   :  { %s1134_s13 = scalar_lea.vmem %s36_s27, 256  ;;  %p1139_p4 = scmp.lt.s32.totalorder %s36_s27, %s36_s27 }
   0xf   :  { %p1135_p3 = scmp.ne.s32.totalorder %s36_s27, %s1134_s13  ;;  %p1140_p5 = scmp.lt.s32.totalorder %s1134_s13, %s1134_s13 }
  0x11   :  { %p1141_p6 = por %p1140_p5, %p1139_p4 }
  0x13   :  { %p1142_p7 = pnand %p1141_p6, %p1135_p3 }
  0x15   :  { %1145 = shalt.err (!%p1142_p7)
}
  0x16   :  { %38 = dma.hbm_to_vmem [thread:$0]  %s1549_s1, 256, %s36_s27, [#allocation7]  }
  0x17   :  { %s1146_s18 = scalar_lea.hbm %s1548_s0, 128 }
  0x18   :  { %p1147_p8 = scmp.ne.s32.totalorder %s1548_s0, %s1146_s18  ;;  %p1150_p9 = scmp.lt.u32.totalorder %s1146_s18, %s1548_s0 }
  0x1a   :  { %p1152_p10 = pnand %p1150_p9, %p1147_p8 }
  0x1c   :  { %1155 = shalt.err (!%p1152_p10)
}
  0x1d   :  { %s1156_s23 = scalar_lea.vmem %s1271_s29, 128  ;;  %s1160_s1 = scalar_lea.vmem %s1271_s29, 2048 }
  0x1e   :  { %p1157_p11 = scmp.ne.s32.totalorder %s1271_s29, %s1156_s23  ;;  %p1161_p12 = scmp.lt.s32.totalorder %s1271_s29, %s1271_s29 }
  0x1f   :  { %p1162_p13 = scmp.lt.s32.totalorder %s1160_s1, %s1156_s23 }
  0x21   :  { %p1163_p0 = por %p1162_p13, %p1161_p12 }
  0x23   :  { %p1164_p1 = pnand %p1163_p0, %p1157_p11 }
  0x25   :  { %1167 = shalt.err (!%p1164_p1)
}
  0x26   :  { %s1220_s24 = smov 128   ;;  %s1221_s25 = smov 8  }
  0x27   :  { %28 = dma.hbm_to_vmem [thread:$0]  %s1548_s0, 128, %s1271_s29, [#allocation4], %s1220_s24, %s1220_s24, %s1221_s25  }
  0x28   :  { %s1222_s28 = smov [#allocation8]   ;;  %s1168_s10 = scalar_lea.hbm %s1551_s3, 8192 }
  0x29   :  { %s46_s30 = sshll.u32 %s1222_s28, 4  ;;  %p1169_p2 = scmp.ne.s32.totalorder %s1551_s3, %s1168_s10  ;;  %s47_s30 = int_to_ptr.vmem [resolvable:$true] %s46_s30 }
  0x2a   :  { %p1172_p3 = scmp.lt.u32.totalorder %s1168_s10, %s1551_s3 }
  0x2c   :  { %p1174_p4 = pnand %p1172_p3, %p1169_p2 }
  0x2e   :  { %1177 = shalt.err (!%p1174_p4)
}
  0x2f   :  { %s1178_s14 = scalar_lea.vmem %s47_s30, 8192  ;;  %p1183_p6 = scmp.lt.s32.totalorder %s47_s30, %s47_s30 }
  0x30   :  { %p1179_p5 = scmp.ne.s32.totalorder %s47_s30, %s1178_s14  ;;  %p1184_p7 = scmp.lt.s32.totalorder %s1178_s14, %s1178_s14 }
  0x32   :  { %p1185_p8 = por %p1184_p7, %p1183_p6 }
  0x34   :  { %p1186_p9 = pnand %p1185_p8, %p1179_p5 }
  0x36   :  { %1189 = shalt.err (!%p1186_p9)
}
  0x37   :  { %s1223_s0 = smov 256   ;;  %s1224_s29 = smov 16  }
  0x38   :  { %52 = dma.hbm_to_vmem [thread:$0]  %s1551_s3, 8192, %s47_s30, [#allocation7], %s1223_s0, %s1223_s0, %s1224_s29  }
  0x39   :  { %1212 = dma.done.wait [#allocation4], 2048  }
  0x3a   :  { %1213 = vsyncadd [#allocation4], 4294965248 }
  0x3b   :  { %1214 = dma.done.wait [#allocation7], 8448  }
  0x3c   :  { %1215 = vsyncadd [#allocation7], 4294958848  ;;  %v1225_v1 = vmov 0.0   ;;  %v85_v2 = vld [vmem:[#allocation6 + $0x8] sm:$0xff]  ;;  %v84_v3 = vld [vmem:[#allocation6] sm:$0xff]  ;;  %vm98_vm0 = vcmask 64512  }
  0x3d   :  { %211 = vmatprep.mubr.f32.mxu0 %v1225_v1  ;;  %v68_v4 = vld [vmem:[#allocation3] sm:$0xff]  ;;  %147 = vmatprep.subr.mxu0 %v85_v2  ;;  %v69_v5 = vld [vmem:[#allocation3 + $0x8] sm:$0xff]  ;;  %v70_v6 = vld [vmem:[#allocation3 + $0x10] sm:$0xff]  ;;  %vm754_vm1 = vcmask 130112   ;;  %vm761_vm2 = vcmask 195712   ;;  %vm768_vm3 = vcmask 261312  }
  0x3e   :  { %148 = vmatpush1.msra.mxu0 %v84_v3  ;;  %v341_v7 = vld [vmem:[#allocation8 + $0x8] sm:$0xff]  ;;  %v343_v8 = vld [vmem:[#allocation8 + $0x18] sm:$0xff]  ;;  %v340_v9 = vld [vmem:[#allocation8] sm:$0xff]  ;;  %vm775_vm4 = vcmask 326912   ;;  %vm782_vm5 = vcmask 392512   ;;  %vm789_vm6 = vcmask 458112  }
  0x3f   :  { %872 = vmatmul.mubr.msk.f32.vlgmr.msra.gmra.mrb[0].mxu0 %vm98_vm0, %v68_v4  ;;  %v888_v10 = vpack.c.bf16 %v343_v8, %v341_v7  ;;  %v342_v11 = vld [vmem:[#allocation8 + $0x10] sm:$0xff]  ;;  %v345_v12 = vld [vmem:[#allocation8 + $0x28] sm:$0xff]  ;;  %v347_v13 = vld [vmem:[#allocation8 + $0x38] sm:$0xff]  ;;  %vm796_vm7 = vcmask 523712   ;;  %vm803_vm8 = vcmask 589312   ;;  %vm810_vm9 = vcmask 654912  }
  0x40   :  { %217 = vmatprep.mubr.f32.mxu0 %v1225_v1  ;;  %v890_v14 = vpack.c.bf16 %v342_v11, %v340_v9  ;;  %v892_v15 = vpack.c.bf16 %v347_v13, %v345_v12  ;;  %v344_v16 = vld [vmem:[#allocation8 + $0x20] sm:$0xff]  ;;  %v346_v17 = vld [vmem:[#allocation8 + $0x30] sm:$0xff]  ;;  %v349_v18 = vld [vmem:[#allocation8 + $0x48] sm:$0xff]  ;;  %vm817_vm10 = vcmask 720512   ;;  %vm824_vm11 = vcmask 786112  }
  0x41   :  { %889 = vmatprep.subr.bf16.mxu0 %v888_v10  ;;  %v351_v19 = vld [vmem:[#allocation8 + $0x58] sm:$0xff]  ;;  %952 = vmatprep.subr.bf16.mxu1 %v888_v10  ;;  %v894_v20 = vpack.c.bf16 %v346_v17, %v344_v16  ;;  %v348_v22 = vld [vmem:[#allocation8 + $0x40] sm:$0xff]  ;;  %v350_v23 = vld [vmem:[#allocation8 + $0x50] sm:$0xff]  ;;  %vm831_vm12 = vcmask 851712   ;;  %vm838_vm13 = vcmask 917312   ;;  %vm845_vm14 = vcmask 982912  }
  0x42   :  { %891 = vmatpush1.bf16.msra.mxu0 %v890_v14  ;;  %968 = vmatpush1.bf16.msra.mxu1 %v890_v14  ;;  %v896_v21 = vpack.c.bf16 %v351_v19, %v349_v18  ;;  %v71_v24 = vld [vmem:[#allocation3 + $0x18] sm:$0xff]  ;;  %v355_v26 = vld [vmem:[#allocation8 + $0x78] sm:$0xff]  ;;  %v898_v27 = vpack.c.bf16 %v350_v23, %v348_v22  ;;  %v352_v29 = vld [vmem:[#allocation8 + $0x60] sm:$0xff]  ;;  %vm852_vm15 = vcmask 1048512  }
  0x43   :  { %873 = vmatmul.mubr.msk.f32.gmra.mrb[2].mxu0 %vm98_vm0, %v69_v5  ;;  %893 = vmatprep.subr.bf16.mxu0 %v892_v15  ;;  %v353_v25 = vld [vmem:[#allocation8 + $0x68] sm:$0xff]  ;;  %v354_v30 = vld [vmem:[#allocation8 + $0x70] sm:$0xff]  ;;  %v359_v33 = vld [vmem:[#allocation8 + $0x98] sm:$0xff] }
  0x44   :  { %223 = vmatprep.mubr.f32.mxu0 %v1225_v1  ;;  %953 = vmatprep.subr.bf16.mxu1 %v892_v15  ;;  %v900_v28 = vpack.c.bf16 %v355_v26, %v353_v25  ;;  %v72_v31 = vld [vmem:[#allocation3 + $0x20] sm:$0xff]  ;;  %v357_v32 = vld [vmem:[#allocation8 + $0x88] sm:$0xff]  ;;  %v902_v34 = vpack.c.bf16 %v354_v30, %v352_v29  ;;  %v356_v36 = vld [vmem:[#allocation8 + $0x80] sm:$0xff] }
  0x45   :  { %v904_v35 = vpack.c.bf16 %v359_v33, %v357_v32  ;;  %v358_v37 = vld [vmem:[#allocation8 + $0x90] sm:$0xff]  ;;  %v73_v38 = vld [vmem:[#allocation3 + $0x28] sm:$0xff]  ;;  %v361_v39 = vld [vmem:[#allocation8 + $0xa8] sm:$0xff] }
  0x46   :  { %895 = vmatpush1.bf16.msra.mxu0 %v894_v20  ;;  %969 = vmatpush1.bf16.msra.mxu1 %v894_v20  ;;  %v363_v40 = vld [vmem:[#allocation8 + $0xb8] sm:$0xff]  ;;  %v906_v41 = vpack.c.bf16 %v358_v37, %v356_v36  ;;  %v360_v43 = vld [vmem:[#allocation8 + $0xa0] sm:$0xff]  ;;  %v362_v44 = vld [vmem:[#allocation8 + $0xb0] sm:$0xff] }
  0x47   :  { %874 = vmatmul.mubr.msk.f32.gmra.mrb[4].mxu0 %vm98_vm0, %v70_v6  ;;  %897 = vmatprep.subr.bf16.mxu0 %v896_v21  ;;  %v908_v42 = vpack.c.bf16 %v363_v40, %v361_v39  ;;  %v74_v45 = vld [vmem:[#allocation3 + $0x30] sm:$0xff]  ;;  %v365_v46 = vld [vmem:[#allocation8 + $0xc8] sm:$0xff]  ;;  %v367_v47 = vld [vmem:[#allocation8 + $0xd8] sm:$0xff]  ;;  %v910_v48 = vpack.c.bf16 %v362_v44, %v360_v43 }
  0x48   :  { %229 = vmatprep.mubr.f32.mxu0 %v1225_v1  ;;  %954 = vmatprep.subr.bf16.mxu1 %v896_v21  ;;  %v912_v49 = vpack.c.bf16 %v367_v47, %v365_v46  ;;  %v364_v50 = vld [vmem:[#allocation8 + $0xc0] sm:$0xff]  ;;  %v366_v51 = vld [vmem:[#allocation8 + $0xd0] sm:$0xff]  ;;  %v75_v52 = vld [vmem:[#allocation3 + $0x38] sm:$0xff] }
  0x49   :  { %v369_v53 = vld [vmem:[#allocation8 + $0xe8] sm:$0xff]  ;;  %v371_v54 = vld [vmem:[#allocation8 + $0xf8] sm:$0xff]  ;;  %v914_v55 = vpack.c.bf16 %v366_v51, %v364_v50  ;;  %v368_v57 = vld [vmem:[#allocation8 + $0xe0] sm:$0xff] }
  0x4a   :  { %899 = vmatpush1.bf16.msra.mxu0 %v898_v27  ;;  %970 = vmatpush1.bf16.msra.mxu1 %v898_v27  ;;  %v916_v56 = vpack.c.bf16 %v371_v54, %v369_v53  ;;  %v370_v58 = vld [vmem:[#allocation8 + $0xf0] sm:$0xff]  ;;  %v373_v60 = vld [vmem:[#allocation8 + $0x108] sm:$0xff]  ;;  %v375_v61 = vld [vmem:[#allocation8 + $0x118] sm:$0xff] }
  0x4b   :  { %875 = vmatmul.mubr.msk.f32.gmra.mrb[6].mxu0 %vm98_vm0, %v71_v24  ;;  %901 = vmatprep.subr.bf16.mxu0 %v900_v28  ;;  %v76_v59 = vld [vmem:[#allocation3 + $0x40] sm:$0xff]  ;;  %v918_v62 = vpack.c.bf16 %v370_v58, %v368_v57  ;;  %v920_v63 = vpack.c.bf16 %v375_v61, %v373_v60  ;;  %v372_v0 = vld [vmem:[#allocation8 + $0x100] sm:$0xff]  ;;  %v77_v3 = vld [vmem:[#allocation3 + $0x48] sm:$0xff] }
  0x4c   :  { %235 = vmatprep.mubr.f32.mxu0 %v1225_v1  ;;  %955 = vmatprep.subr.bf16.mxu1 %v900_v28  ;;  %v374_v2 = vld [vmem:[#allocation8 + $0x110] sm:$0xff]  ;;  %v377_v4 = vld [vmem:[#allocation8 + $0x128] sm:$0xff]  ;;  %v379_v5 = vld [vmem:[#allocation8 + $0x138] sm:$0xff] }
  0x4d   :  { %v922_v6 = vpack.c.bf16 %v374_v2, %v372_v0  ;;  %v924_v7 = vpack.c.bf16 %v379_v5, %v377_v4  ;;  %v376_v8 = vld [vmem:[#allocation8 + $0x120] sm:$0xff]  ;;  %v378_v9 = vld [vmem:[#allocation8 + $0x130] sm:$0xff]  ;;  %v381_v11 = vld [vmem:[#allocation8 + $0x148] sm:$0xff] }
  0x4e   :  { %903 = vmatpush1.bf16.msra.mxu0 %v902_v34  ;;  %971 = vmatpush1.bf16.msra.mxu1 %v902_v34  ;;  %v78_v10 = vld [vmem:[#allocation3 + $0x50] sm:$0xff]  ;;  %v383_v12 = vld [vmem:[#allocation8 + $0x158] sm:$0xff]  ;;  %v926_v13 = vpack.c.bf16 %v378_v9, %v376_v8  ;;  %v382_v16 = vld [vmem:[#allocation8 + $0x150] sm:$0xff] }
  0x4f   :  { %876 = vmatmul.mubr.msk.f32.gmra.mrb[8].mxu0 %vm98_vm0, %v72_v31  ;;  %905 = vmatprep.subr.bf16.mxu0 %v904_v35  ;;  %v928_v14 = vpack.c.bf16 %v383_v12, %v381_v11  ;;  %v380_v15 = vld [vmem:[#allocation8 + $0x140] sm:$0xff]  ;;  %v79_v17 = vld [vmem:[#allocation3 + $0x58] sm:$0xff]  ;;  %v387_v19 = vld [vmem:[#allocation8 + $0x178] sm:$0xff] }
  0x50   :  { %241 = vmatprep.mubr.f32.mxu0 %v1225_v1  ;;  %956 = vmatprep.subr.bf16.mxu1 %v904_v35  ;;  %v385_v18 = vld [vmem:[#allocation8 + $0x168] sm:$0xff]  ;;  %v930_v20 = vpack.c.bf16 %v382_v16, %v380_v15  ;;  %v384_v22 = vld [vmem:[#allocation8 + $0x160] sm:$0xff]  ;;  %v386_v23 = vld [vmem:[#allocation8 + $0x170] sm:$0xff] }
  0x51   :  { %v932_v21 = vpack.c.bf16 %v387_v19, %v385_v18  ;;  %v80_v24 = vld [vmem:[#allocation3 + $0x60] sm:$0xff]  ;;  %v389_v25 = vld [vmem:[#allocation8 + $0x188] sm:$0xff]  ;;  %v391_v26 = vld [vmem:[#allocation8 + $0x198] sm:$0xff]  ;;  %v934_v27 = vpack.c.bf16 %v386_v23, %v384_v22 }
  0x52   :  { %907 = vmatpush1.bf16.msra.mxu0 %v906_v41  ;;  %972 = vmatpush1.bf16.msra.mxu1 %v906_v41  ;;  %v936_v28 = vpack.c.bf16 %v391_v26, %v389_v25  ;;  %v81_v29 = vld [vmem:[#allocation3 + $0x68] sm:$0xff]  ;;  %v82_v30 = vld [vmem:[#allocation3 + $0x70] sm:$0xff]  ;;  %v83_v31 = vld [vmem:[#allocation3 + $0x78] sm:$0xff] }
  0x53   :  { %877 = vmatmul.mubr.msk.f32.gmra.mrb[10].mxu0 %vm98_vm0, %v73_v38  ;;  %909 = vmatprep.subr.bf16.mxu0 %v908_v42  ;;  %v388_v32 = vld [vmem:[#allocation8 + $0x180] sm:$0xff]  ;;  %v390_v33 = vld [vmem:[#allocation8 + $0x190] sm:$0xff]  ;;  %v393_v35 = vld [vmem:[#allocation8 + $0x1a8] sm:$0xff] }
  0x54   :  { %247 = vmatprep.mubr.f32.mxu0 %v1225_v1  ;;  %957 = vmatprep.subr.bf16.mxu1 %v908_v42  ;;  %v938_v34 = vpack.c.bf16 %v390_v33, %v388_v32  ;;  %v395_v36 = vld [vmem:[#allocation8 + $0x1b8] sm:$0xff]  ;;  %v392_v38 = vld [vmem:[#allocation8 + $0x1a0] sm:$0xff]  ;;  %v394_v39 = vld [vmem:[#allocation8 + $0x1b0] sm:$0xff] }
  0x55   :  { %v940_v37 = vpack.c.bf16 %v395_v36, %v393_v35  ;;  %v942_v40 = vpack.c.bf16 %v394_v39, %v392_v38  ;;  %v397_v41 = vld [vmem:[#allocation8 + $0x1c8] sm:$0xff]  ;;  %v399_v42 = vld [vmem:[#allocation8 + $0x1d8] sm:$0xff]  ;;  %v396_v43 = vld [vmem:[#allocation8 + $0x1c0] sm:$0xff] }
  0x56   :  { %911 = vmatpush1.bf16.msra.mxu0 %v910_v48  ;;  %973 = vmatpush1.bf16.msra.mxu1 %v910_v48  ;;  %v398_v44 = vld [vmem:[#allocation8 + $0x1d0] sm:$0xff]  ;;  %v401_v46 = vld [vmem:[#allocation8 + $0x1e8] sm:$0xff]  ;;  %v403_v47 = vld [vmem:[#allocation8 + $0x1f8] sm:$0xff] }
  0x57   :  { %878 = vmatmul.mubr.msk.f32.gmra.mrb[12].mxu0 %vm98_vm0, %v74_v45  ;;  %913 = vmatprep.subr.bf16.mxu0 %v912_v49  ;;  %v946_v45 = vpack.c.bf16 %v398_v44, %v396_v43  ;;  %v948_v48 = vpack.c.bf16 %v403_v47, %v401_v46  ;;  %v402_v50 = vld [vmem:[#allocation8 + $0x1f0] sm:$0xff] }
  0x58   :  { %253 = vmatprep.mubr.f32.mxu0 %v1225_v1  ;;  %958 = vmatprep.subr.bf16.mxu1 %v912_v49  ;;  %v400_v49 = vld [vmem:[#allocation8 + $0x1e0] sm:$0xff] }
  0x59   :  { %v950_v51 = vpack.c.bf16 %v402_v50, %v400_v49 }
  0x5a   :  { %915 = vmatpush1.bf16.msra.mxu0 %v914_v55  ;;  %974 = vmatpush1.bf16.msra.mxu1 %v914_v55  ;;  %v86_v55 = vld [vmem:[%s1550_s2] sm:$0x3] }
  0x5b   :  { %879 = vmatmul.mubr.msk.f32.gmra.mrb[14].mxu0 %vm98_vm0, %v75_v52  ;;  %917 = vmatprep.subr.bf16.mxu0 %v916_v56  ;;  %v88_v52 = vlaneseq }
  0x5c   :  { %259 = vmatprep.mubr.f32.mxu0 %v1225_v1  ;;  %959 = vmatprep.subr.bf16.mxu1 %v916_v56 }
  0x5d   :  { %v1348_v53 = vshrl.u32 %v88_v52, 7 }
  0x5e   :  { %919 = vmatpush1.bf16.msra.mxu0 %v918_v62  ;;  %975 = vmatpush1.bf16.msra.mxu1 %v918_v62 }
  0x5f   :  { %880 = vmatmul.mubr.msk.f32.gmra.mrb[16].mxu0 %vm98_vm0, %v76_v59  ;;  %921 = vmatprep.subr.bf16.mxu0 %v920_v63  ;;  %v1351_v54 = vsub.s32 0, %v1348_v53  ;;  %v1357_v56 = vsub.s32 1, %v1348_v53 }
  0x60   :  { %265 = vmatprep.mubr.f32.mxu0 %v1225_v1  ;;  %960 = vmatprep.subr.bf16.mxu1 %v920_v63 }
  0x61   :  { %v1360_v57 = vrot.slane %v86_v55, %v1351_v54  ;;  %v1363_v58 = vrot.slane %v86_v55, %v1357_v56 }
  0x62   :  { %923 = vmatpush1.bf16.msra.mxu0 %v922_v6  ;;  %976 = vmatpush1.bf16.msra.mxu1 %v922_v6 }
  0x63   :  { %881 = vmatmul.mubr.msk.f32.gmra.mrb[18].mxu0 %vm98_vm0, %v77_v3  ;;  %925 = vmatprep.subr.bf16.mxu0 %v924_v7 }
  0x64   :  { %271 = vmatprep.mubr.f32.mxu0 %v1225_v1  ;;  %961 = vmatprep.subr.bf16.mxu1 %v924_v7 }
  0x66   :  { %927 = vmatpush1.bf16.msra.mxu0 %v926_v13  ;;  %977 = vmatpush1.bf16.msra.mxu1 %v926_v13 }
  0x67   :  { %882 = vmatmul.mubr.msk.f32.gmra.mrb[20].mxu0 %vm98_vm0, %v78_v10  ;;  %929 = vmatprep.subr.bf16.mxu0 %v928_v14 }
  0x68   :  { %277 = vmatprep.mubr.f32.mxu0 %v1225_v1  ;;  %962 = vmatprep.subr.bf16.mxu1 %v928_v14 }
  0x6a   :  { %931 = vmatpush1.bf16.msra.mxu0 %v930_v20  ;;  %978 = vmatpush1.bf16.msra.mxu1 %v930_v20 }
  0x6b   :  { %883 = vmatmul.mubr.msk.f32.gmra.mrb[22].mxu0 %vm98_vm0, %v79_v17  ;;  %933 = vmatprep.subr.bf16.mxu0 %v932_v21 }
  0x6c   :  { %283 = vmatprep.mubr.f32.mxu0 %v1225_v1  ;;  %963 = vmatprep.subr.bf16.mxu1 %v932_v21 }
  0x6e   :  { %935 = vmatpush1.bf16.msra.mxu0 %v934_v27  ;;  %979 = vmatpush1.bf16.msra.mxu1 %v934_v27 }
  0x6f   :  { %884 = vmatmul.mubr.msk.f32.gmra.mrb[24].mxu0 %vm98_vm0, %v80_v24  ;;  %937 = vmatprep.subr.bf16.mxu0 %v936_v28 }
  0x70   :  { %289 = vmatprep.mubr.f32.mxu0 %v1225_v1  ;;  %964 = vmatprep.subr.bf16.mxu1 %v936_v28 }
  0x72   :  { %939 = vmatpush1.bf16.msra.mxu0 %v938_v34  ;;  %980 = vmatpush1.bf16.msra.mxu1 %v938_v34 }
  0x73   :  { %885 = vmatmul.mubr.msk.f32.gmra.mrb[26].mxu0 %vm98_vm0, %v81_v29  ;;  %941 = vmatprep.subr.bf16.mxu0 %v940_v37 }
  0x74   :  { %295 = vmatprep.mubr.f32.mxu0 %v1225_v1  ;;  %965 = vmatprep.subr.bf16.mxu1 %v940_v37 }
  0x76   :  { %943 = vmatpush1.bf16.msra.mxu0 %v942_v40  ;;  %981 = vmatpush1.bf16.msra.mxu1 %v942_v40 }
  0x77   :  { %886 = vmatmul.mubr.msk.f32.gmra.mrb[28].mxu0 %vm98_vm0, %v82_v30 }
  0x78   :  { %301 = vmatprep.mubr.f32.mxu0 %v1225_v1  ;;  %v944_v1 = vpack.c.bf16 %v399_v42, %v397_v41 }
  0x7a   :  { %945 = vmatprep.subr.bf16.mxu0 %v944_v1  ;;  %966 = vmatprep.subr.bf16.mxu1 %v944_v1 }
  0x7b   :  { %887 = vmatmul.mubr.msk.f32.gmra.mrb[30].mxu0 %vm98_vm0, %v83_v31  ;;  %982 = vmatpush1.bf16.msra.mxu1 %v946_v45 }
  0x7c   :  { %947 = vmatpush1.bf16.msra.mxu0 %v946_v45  ;;  %967 = vmatprep.subr.bf16.mxu1 %v948_v48 }
  0x7d   :  { %949 = vmatprep.subr.bf16.mxu0 %v948_v48 }
  0x7f   :  { %983 = vmatpush1.bf16.msra.mxu1 %v950_v51 }
  0x80   :  { %951 = vmatpush1.bf16.msra.mxu0 %v950_v51 }
 0x112   :  { %v213_v59 = vpop.f32.mrb[0].mxu0 }
 0x113   :  { %v214_v60 = vadd.f32 %v213_v59, %v1360_v57  ;;  %v215_v61 = vpop.f32.mrb[1].mxu0 }
 0x114   :  { %v216_v62 = vadd.f32 %v215_v61, %v1363_v58 }
 0x116   :  { %996 = vtanh.f32 %v216_v62  ;;  %v219_v63 = vpop.f32.mrb[2].mxu0 }
 0x117   :  { %998 = vtanh.f32 %v214_v60  ;;  %v220_v0 = vadd.f32 %v219_v63, %v1360_v57  ;;  %v221_v2 = vpop.f32.mrb[3].mxu0 }
 0x118   :  { %v222_v3 = vadd.f32 %v221_v2, %v1363_v58 }
 0x11a   :  { %1000 = vtanh.f32 %v222_v3  ;;  %v225_v4 = vpop.f32.mrb[4].mxu0 }
 0x11b   :  { %1002 = vtanh.f32 %v220_v0  ;;  %v226_v5 = vadd.f32 %v225_v4, %v1360_v57  ;;  %v227_v6 = vpop.f32.mrb[5].mxu0 }
 0x11c   :  { %v228_v7 = vadd.f32 %v227_v6, %v1363_v58 }
 0x11e   :  { %1004 = vtanh.f32 %v228_v7  ;;  %v231_v8 = vpop.f32.mrb[6].mxu0 }
 0x11f   :  { %1006 = vtanh.f32 %v226_v5  ;;  %v232_v9 = vadd.f32 %v231_v8, %v1360_v57  ;;  %v233_v10 = vpop.f32.mrb[7].mxu0 }
 0x120   :  { %v997_v11 = vpop.eup %996  ;;  %v234_v12 = vadd.f32 %v233_v10, %v1363_v58 }
 0x121   :  { %v999_v13 = vpop.eup %998  ;;  %480 = vmatprep.mubr.f32.mxu0 %v997_v11 }
 0x122   :  { %1008 = vtanh.f32 %v234_v12  ;;  %v237_v14 = vpop.f32.mrb[8].mxu0  ;;  %481 = vmatmul.mubr.f32.vlgmr.msra.gmra.mrb[32].mxu0 %v999_v13 }
 0x123   :  { %1010 = vtanh.f32 %v232_v9  ;;  %v238_v15 = vadd.f32 %v237_v14, %v1360_v57  ;;  %v239_v16 = vpop.f32.mrb[9].mxu0 }
 0x124   :  { %v1001_v17 = vpop.eup %1000  ;;  %v240_v18 = vadd.f32 %v239_v16, %v1363_v58 }
 0x125   :  { %v1003_v19 = vpop.eup %1002  ;;  %486 = vmatprep.mubr.f32.mxu0 %v1001_v17 }
 0x126   :  { %1012 = vtanh.f32 %v240_v18  ;;  %v243_v20 = vpop.f32.mrb[10].mxu0  ;;  %487 = vmatmul.mubr.f32.gmra.mrb[34].mxu0 %v1003_v19 }
 0x127   :  { %1014 = vtanh.f32 %v238_v15  ;;  %v244_v21 = vadd.f32 %v243_v20, %v1360_v57  ;;  %v245_v22 = vpop.f32.mrb[11].mxu0 }
 0x128   :  { %v1005_v23 = vpop.eup %1004  ;;  %v246_v24 = vadd.f32 %v245_v22, %v1363_v58 }
 0x129   :  { %v1007_v25 = vpop.eup %1006  ;;  %492 = vmatprep.mubr.f32.mxu0 %v1005_v23 }
 0x12a   :  { %1016 = vtanh.f32 %v246_v24  ;;  %v249_v26 = vpop.f32.mrb[12].mxu0  ;;  %493 = vmatmul.mubr.f32.gmra.mrb[36].mxu0 %v1007_v25 }
 0x12b   :  { %1018 = vtanh.f32 %v244_v21  ;;  %v250_v27 = vadd.f32 %v249_v26, %v1360_v57  ;;  %v251_v28 = vpop.f32.mrb[13].mxu0 }
 0x12c   :  { %v1009_v29 = vpop.eup %1008  ;;  %v252_v30 = vadd.f32 %v251_v28, %v1363_v58 }
 0x12d   :  { %v1011_v31 = vpop.eup %1010  ;;  %1020 = vtanh.f32 %v250_v27  ;;  %498 = vmatprep.mubr.f32.mxu0 %v1009_v29 }
 0x12e   :  { %1022 = vtanh.f32 %v252_v30  ;;  %v255_v32 = vpop.f32.mrb[14].mxu0  ;;  %499 = vmatmul.mubr.f32.gmra.mrb[38].mxu0 %v1011_v31 }
 0x12f   :  { %v256_v33 = vadd.f32 %v255_v32, %v1360_v57  ;;  %v257_v34 = vpop.f32.mrb[15].mxu0 }
 0x130   :  { %v1013_v35 = vpop.eup %1012  ;;  %v258_v36 = vadd.f32 %v257_v34, %v1363_v58 }
 0x131   :  { %v1015_v37 = vpop.eup %1014  ;;  %1024 = vtanh.f32 %v256_v33  ;;  %504 = vmatprep.mubr.f32.mxu0 %v1013_v35 }
 0x132   :  { %1026 = vtanh.f32 %v258_v36  ;;  %v261_v38 = vpop.f32.mrb[16].mxu0  ;;  %505 = vmatmul.mubr.f32.gmra.mrb[40].mxu0 %v1015_v37 }
 0x133   :  { %v262_v39 = vadd.f32 %v261_v38, %v1360_v57  ;;  %v263_v40 = vpop.f32.mrb[17].mxu0 }
 0x134   :  { %v1017_v41 = vpop.eup %1016  ;;  %v264_v42 = vadd.f32 %v263_v40, %v1363_v58 }
 0x135   :  { %v1019_v1 = vpop.eup %1018  ;;  %1028 = vtanh.f32 %v262_v39  ;;  %510 = vmatprep.mubr.f32.mxu0 %v1017_v41 }
 0x136   :  { %1030 = vtanh.f32 %v264_v42  ;;  %v267_v43 = vpop.f32.mrb[18].mxu0  ;;  %511 = vmatmul.mubr.f32.gmra.mrb[42].mxu0 %v1019_v1 }
 0x137   :  { %v1021_v44 = vpop.eup %1020  ;;  %v268_v45 = vadd.f32 %v267_v43, %v1360_v57  ;;  %v269_v46 = vpop.f32.mrb[19].mxu0  ;;  %v609_v43 = vld [vmem:[%s1553_s5] sm:$0x3]  ;;  %s1227_s5 = smov [#allocation9]  }
 0x138   :  { %v1023_v47 = vpop.eup %1022  ;;  %v270_v48 = vadd.f32 %v269_v46, %v1363_v58  ;;  %s862_s20 = sshll.u32 %s1227_s5, 4  ;;  %s863_s20 = int_to_ptr.vmem [resolvable:$true] %s862_s20 }
 0x139   :  { %1032 = vtanh.f32 %v268_v45  ;;  %516 = vmatprep.mubr.f32.mxu0 %v1023_v47  ;;  %s1190_s21 = scalar_lea.vmem %s863_s20, 16  ;;  %s1194_s22 = scalar_lea.vmem %s863_s20, 32 }
 0x13a   :  { %1034 = vtanh.f32 %v270_v48  ;;  %v273_v49 = vpop.f32.mrb[20].mxu0  ;;  %517 = vmatmul.mubr.f32.gmra.mrb[44].mxu0 %v1021_v44  ;;  %v1416_v48 = vrot.slane %v609_v43, %v1351_v54  ;;  %p1191_p10 = scmp.ne.s32.totalorder %s863_s20, %s1190_s21  ;;  %p1195_p11 = scmp.lt.s32.totalorder %s863_s20, %s863_s20 }
 0x13b   :  { %v1025_v50 = vpop.eup %1024  ;;  %v274_v51 = vadd.f32 %v273_v49, %v1360_v57  ;;  %v275_v55 = vpop.f32.mrb[21].mxu0  ;;  %v1419_v49 = vrot.slane %v609_v43, %v1357_v56  ;;  %p1196_p12 = scmp.lt.s32.totalorder %s1194_s22, %s1190_s21 }
 0x13c   :  { %v1027_v59 = vpop.eup %1026  ;;  %v276_v60 = vadd.f32 %v275_v55, %v1363_v58 }
 0x13d   :  { %1036 = vtanh.f32 %v274_v51  ;;  %522 = vmatprep.mubr.f32.mxu1 %v1027_v59  ;;  %p1197_p13 = por %p1196_p12, %p1195_p11 }
 0x13e   :  { %1038 = vtanh.f32 %v276_v60  ;;  %v279_v61 = vpop.f32.mrb[22].mxu0  ;;  %523 = vmatmul.mubr.f32.vlgmr.msra.gmra.mrb[0].mxu1 %v1025_v50 }
 0x13f   :  { %v1029_v62 = vpop.eup %1028  ;;  %v280_v63 = vadd.f32 %v279_v61, %v1360_v57  ;;  %v281_v0 = vpop.f32.mrb[23].mxu0  ;;  %p1198_p0 = pnand %p1197_p13, %p1191_p10 }
 0x140   :  { %v1031_v2 = vpop.eup %1030  ;;  %v282_v3 = vadd.f32 %v281_v0, %v1363_v58 }
 0x141   :  { %1040 = vtanh.f32 %v280_v63  ;;  %528 = vmatprep.mubr.f32.mxu1 %v1031_v2 }
 0x142   :  { %1042 = vtanh.f32 %v282_v3  ;;  %v285_v4 = vpop.f32.mrb[24].mxu0  ;;  %529 = vmatmul.mubr.f32.gmra.mrb[2].mxu1 %v1029_v62 }
 0x143   :  { %v1033_v5 = vpop.eup %1032  ;;  %v286_v6 = vadd.f32 %v285_v4, %v1360_v57  ;;  %v287_v7 = vpop.f32.mrb[25].mxu0 }
 0x144   :  { %v1035_v8 = vpop.eup %1034  ;;  %v288_v9 = vadd.f32 %v287_v7, %v1363_v58 }
 0x145   :  { %1044 = vtanh.f32 %v286_v6  ;;  %534 = vmatprep.mubr.f32.mxu1 %v1035_v8 }
 0x146   :  { %1046 = vtanh.f32 %v288_v9  ;;  %v291_v10 = vpop.f32.mrb[26].mxu0  ;;  %535 = vmatmul.mubr.f32.gmra.mrb[4].mxu1 %v1033_v5 }
 0x147   :  { %v1037_v11 = vpop.eup %1036  ;;  %v292_v12 = vadd.f32 %v291_v10, %v1360_v57  ;;  %v293_v13 = vpop.f32.mrb[27].mxu0 }
 0x148   :  { %v1039_v14 = vpop.eup %1038  ;;  %v294_v15 = vadd.f32 %v293_v13, %v1363_v58 }
 0x149   :  { %1048 = vtanh.f32 %v292_v12  ;;  %540 = vmatprep.mubr.f32.mxu1 %v1039_v14 }
 0x14a   :  { %1050 = vtanh.f32 %v294_v15  ;;  %v297_v16 = vpop.f32.mrb[28].mxu0  ;;  %541 = vmatmul.mubr.f32.gmra.mrb[6].mxu1 %v1037_v11 }
 0x14b   :  { %v1041_v17 = vpop.eup %1040  ;;  %v298_v18 = vadd.f32 %v297_v16, %v1360_v57  ;;  %v299_v19 = vpop.f32.mrb[29].mxu0 }
 0x14c   :  { %v1043_v20 = vpop.eup %1042  ;;  %v300_v21 = vadd.f32 %v299_v19, %v1363_v58 }
 0x14d   :  { %1052 = vtanh.f32 %v298_v18  ;;  %546 = vmatprep.mubr.f32.mxu1 %v1043_v20 }
 0x14e   :  { %1054 = vtanh.f32 %v300_v21  ;;  %v303_v22 = vpop.f32.mrb[30].mxu0  ;;  %547 = vmatmul.mubr.f32.gmra.mrb[8].mxu1 %v1041_v17 }
 0x14f   :  { %v1045_v23 = vpop.eup %1044  ;;  %v304_v24 = vadd.f32 %v303_v22, %v1360_v57  ;;  %v305_v25 = vpop.f32.mrb[31].mxu0  ;;  %v1226_v57 = vmov 0  }
 0x150   :  { %v1047_v26 = vpop.eup %1046  ;;  %v306_v27 = vadd.f32 %v305_v25, %v1363_v58  ;;  %994 = vset.pattern.permute.xlu1 %v1226_v57  ;;  %995 = vset.pattern.permute.xlu0 %v1226_v57  ;;  %v404_v58 = vld [vmem:[%s1552_s4] sm:$0x3] }
 0x151   :  { %1056 = vtanh.f32 %v304_v24  ;;  %552 = vmatprep.mubr.f32.mxu1 %v1047_v26  ;;  %v1401_v34 = vrot.slane %v404_v58, %v1351_v54  ;;  %v1404_v35 = vrot.slane %v404_v58, %v1357_v56 }
 0x152   :  { %1058 = vtanh.f32 %v306_v27  ;;  %553 = vmatmul.mubr.f32.gmra.mrb[10].mxu1 %v1045_v23 }
 0x153   :  { %v1049_v28 = vpop.eup %1048 }
 0x154   :  { %v1051_v29 = vpop.eup %1050 }
 0x155   :  { %558 = vmatprep.mubr.f32.mxu1 %v1051_v29 }
 0x156   :  { %559 = vmatmul.mubr.f32.gmra.mrb[12].mxu1 %v1049_v28 }
 0x157   :  { %v1053_v30 = vpop.eup %1052 }
 0x158   :  { %v1055_v31 = vpop.eup %1054 }
 0x159   :  { %564 = vmatprep.mubr.f32.mxu1 %v1055_v31 }
 0x15a   :  { %565 = vmatmul.mubr.f32.gmra.mrb[14].mxu1 %v1053_v30 }
 0x15b   :  { %v1057_v32 = vpop.eup %1056 }
 0x15c   :  { %v1059_v33 = vpop.eup %1058 }
 0x15d   :  { %570 = vmatprep.mubr.f32.mxu1 %v1059_v33 }
 0x15e   :  { %571 = vmatmul.mubr.f32.gmra.mrb[16].mxu1 %v1057_v32 }
 0x1f5   :  { %v482_v36 = vpop.f32.mrb[32].mxu0 }
 0x1f6   :  { %v483_v37 = vadd.f32 %v482_v36, %v1401_v34  ;;  %v484_v38 = vpop.f32.mrb[33].mxu0 }
 0x1f7   :  { %v485_v39 = vadd.f32 %v484_v38, %v1404_v35 }
 0x1f8   :  { %1060 = vtanh.f32 %v483_v37 }
 0x1f9   :  { %1062 = vtanh.f32 %v485_v39  ;;  %v488_v40 = vpop.f32.mrb[34].mxu0 }
 0x1fa   :  { %v489_v41 = vadd.f32 %v488_v40, %v1401_v34  ;;  %v490_v42 = vpop.f32.mrb[35].mxu0 }
 0x1fb   :  { %v491_v1 = vadd.f32 %v490_v42, %v1404_v35 }
 0x1fc   :  { %1064 = vtanh.f32 %v489_v41 }
 0x1fd   :  { %1066 = vtanh.f32 %v491_v1  ;;  %v494_v44 = vpop.f32.mrb[36].mxu0 }
 0x1fe   :  { %v495_v45 = vadd.f32 %v494_v44, %v1401_v34  ;;  %v496_v46 = vpop.f32.mrb[37].mxu0 }
 0x1ff   :  { %v497_v47 = vadd.f32 %v496_v46, %v1404_v35 }
 0x200   :  { %1068 = vtanh.f32 %v495_v45 }
 0x201   :  { %1070 = vtanh.f32 %v497_v47  ;;  %v500_v50 = vpop.f32.mrb[38].mxu0 }
 0x202   :  { %v1061_v51 = vpop.eup %1060  ;;  %v501_v55 = vadd.f32 %v500_v50, %v1401_v34  ;;  %v502_v59 = vpop.f32.mrb[39].mxu0 }
 0x203   :  { %v1063_v60 = vpop.eup %1062  ;;  %v503_v61 = vadd.f32 %v502_v59, %v1404_v35  ;;  %v621_v62 = vmul.f32 %v1061_v51, %v1416_v48 }
 0x204   :  { %1072 = vtanh.f32 %v501_v55  ;;  %v622_v63 = vmul.f32 %v1063_v60, %v1419_v49 }
 0x205   :  { %1074 = vtanh.f32 %v503_v61  ;;  %v506_v0 = vpop.f32.mrb[40].mxu0 }
 0x206   :  { %v1065_v2 = vpop.eup %1064  ;;  %v507_v56 = vadd.f32 %v506_v0, %v1401_v34  ;;  %v508_v3 = vpop.f32.mrb[41].mxu0  ;;  %v653_v4 = vadd.f32 %v622_v63, %v621_v62 }
 0x207   :  { %v1067_v5 = vpop.eup %1066  ;;  %v509_v6 = vadd.f32 %v508_v3, %v1404_v35  ;;  %v623_v7 = vmul.f32 %v1065_v2, %v1416_v48 }
 0x208   :  { %1076 = vtanh.f32 %v507_v56  ;;  %654 = vadd.xlane.f32.xlu0 %v653_v4  ;;  %v624_v8 = vmul.f32 %v1067_v5, %v1419_v49 }
 0x209   :  { %1078 = vtanh.f32 %v509_v6  ;;  %v512_v9 = vpop.f32.mrb[42].mxu0 }
 0x20a   :  { %v1069_v10 = vpop.eup %1068  ;;  %v513_v11 = vadd.f32 %v512_v9, %v1401_v34  ;;  %v514_v12 = vpop.f32.mrb[43].mxu0  ;;  %v656_v13 = vadd.f32 %v624_v8, %v623_v7 }
 0x20b   :  { %v1071_v14 = vpop.eup %1070  ;;  %v515_v15 = vadd.f32 %v514_v12, %v1404_v35  ;;  %v625_v16 = vmul.f32 %v1069_v10, %v1416_v48 }
 0x20c   :  { %1080 = vtanh.f32 %v513_v11  ;;  %657 = vadd.xlane.f32.xlu0 %v656_v13  ;;  %v626_v17 = vmul.f32 %v1071_v14, %v1419_v49 }
 0x20d   :  { %1082 = vtanh.f32 %v515_v15  ;;  %v518_v18 = vpop.f32.mrb[44].mxu0 }
 0x20e   :  { %v1073_v19 = vpop.eup %1072  ;;  %v519_v20 = vadd.f32 %v518_v18, %v1401_v34  ;;  %v520_v21 = vpop.f32.mrb[45].mxu0  ;;  %v659_v22 = vadd.f32 %v626_v17, %v625_v16 }
 0x20f   :  { %v1075_v23 = vpop.eup %1074  ;;  %v521_v24 = vadd.f32 %v520_v21, %v1404_v35  ;;  %v627_v25 = vmul.f32 %v1073_v19, %v1416_v48 }
 0x210   :  { %1084 = vtanh.f32 %v519_v20  ;;  %660 = vadd.xlane.f32.xlu1 %v659_v22  ;;  %v628_v26 = vmul.f32 %v1075_v23, %v1419_v49 }
 0x211   :  { %1086 = vtanh.f32 %v521_v24  ;;  %v524_v27 = vpop.f32.mrb[0].mxu1 }
 0x212   :  { %v1077_v28 = vpop.eup %1076  ;;  %v525_v29 = vadd.f32 %v524_v27, %v1401_v34  ;;  %v526_v30 = vpop.f32.mrb[1].mxu1  ;;  %v662_v31 = vadd.f32 %v628_v26, %v627_v25 }
 0x213   :  { %v1079_v32 = vpop.eup %1078  ;;  %v527_v33 = vadd.f32 %v526_v30, %v1404_v35  ;;  %v629_v57 = vmul.f32 %v1077_v28, %v1416_v48 }
 0x214   :  { %1088 = vtanh.f32 %v525_v29  ;;  %663 = vadd.xlane.f32.xlu1 %v662_v31  ;;  %v630_v58 = vmul.f32 %v1079_v32, %v1419_v49  ;;  %v701_v29 = vld [vmem:[#allocation2] sm:$0x1] }
 0x215   :  { %1090 = vtanh.f32 %v527_v33  ;;  %v530_v36 = vpop.f32.mrb[2].mxu1 }
 0x216   :  { %v1081_v37 = vpop.eup %1080  ;;  %v531_v38 = vadd.f32 %v530_v36, %v1401_v34  ;;  %v532_v39 = vpop.f32.mrb[3].mxu1  ;;  %v665_v40 = vadd.f32 %v630_v58, %v629_v57 }
 0x217   :  { %v1083_v41 = vpop.eup %1082  ;;  %v533_v42 = vadd.f32 %v532_v39, %v1404_v35  ;;  %v631_v1 = vmul.f32 %v1081_v37, %v1416_v48 }
 0x218   :  { %1092 = vtanh.f32 %v531_v38  ;;  %666 = vadd.xlane.f32.xlu0 %v665_v40  ;;  %v632_v43 = vmul.f32 %v1083_v41, %v1419_v49 }
 0x219   :  { %1094 = vtanh.f32 %v533_v42  ;;  %v536_v44 = vpop.f32.mrb[4].mxu1 }
 0x21a   :  { %v1085_v45 = vpop.eup %1084  ;;  %v537_v46 = vadd.f32 %v536_v44, %v1401_v34  ;;  %v538_v47 = vpop.f32.mrb[5].mxu1  ;;  %v668_v50 = vadd.f32 %v632_v43, %v631_v1 }
 0x21b   :  { %v1087_v51 = vpop.eup %1086  ;;  %v539_v55 = vadd.f32 %v538_v47, %v1404_v35  ;;  %v633_v59 = vmul.f32 %v1085_v45, %v1416_v48 }
 0x21c   :  { %1096 = vtanh.f32 %v537_v46  ;;  %669 = vadd.xlane.f32.xlu1 %v668_v50  ;;  %v634_v60 = vmul.f32 %v1087_v51, %v1419_v49 }
 0x21d   :  { %1098 = vtanh.f32 %v539_v55  ;;  %v542_v61 = vpop.f32.mrb[6].mxu1 }
 0x21e   :  { %v1089_v62 = vpop.eup %1088  ;;  %v543_v63 = vadd.f32 %v542_v61, %v1401_v34  ;;  %v544_v0 = vpop.f32.mrb[7].mxu1  ;;  %v671_v2 = vadd.f32 %v634_v60, %v633_v59 }
 0x21f   :  { %v1091_v56 = vpop.eup %1090  ;;  %v545_v3 = vadd.f32 %v544_v0, %v1404_v35  ;;  %v635_v4 = vmul.f32 %v1089_v62, %v1416_v48 }
 0x220   :  { %1100 = vtanh.f32 %v543_v63  ;;  %672 = vadd.xlane.f32.xlu0 %v671_v2  ;;  %v636_v5 = vmul.f32 %v1091_v56, %v1419_v49 }
 0x221   :  { %1102 = vtanh.f32 %v545_v3  ;;  %v548_v6 = vpop.f32.mrb[8].mxu1 }
 0x222   :  { %v1093_v7 = vpop.eup %1092  ;;  %v549_v8 = vadd.f32 %v548_v6, %v1401_v34  ;;  %v550_v9 = vpop.f32.mrb[9].mxu1  ;;  %v674_v10 = vadd.f32 %v636_v5, %v635_v4 }
 0x223   :  { %v1095_v11 = vpop.eup %1094  ;;  %v551_v12 = vadd.f32 %v550_v9, %v1404_v35  ;;  %v637_v13 = vmul.f32 %v1093_v7, %v1416_v48 }
 0x224   :  { %1104 = vtanh.f32 %v549_v8  ;;  %675 = vadd.xlane.f32.xlu0 %v674_v10  ;;  %v638_v14 = vmul.f32 %v1095_v11, %v1419_v49 }
 0x225   :  { %1106 = vtanh.f32 %v551_v12  ;;  %v554_v15 = vpop.f32.mrb[10].mxu1 }
 0x226   :  { %v1097_v16 = vpop.eup %1096  ;;  %v555_v17 = vadd.f32 %v554_v15, %v1401_v34  ;;  %v556_v18 = vpop.f32.mrb[11].mxu1  ;;  %v677_v19 = vadd.f32 %v638_v14, %v637_v13 }
 0x227   :  { %v1099_v20 = vpop.eup %1098  ;;  %v557_v21 = vadd.f32 %v556_v18, %v1404_v35  ;;  %v639_v22 = vmul.f32 %v1097_v16, %v1416_v48 }
 0x228   :  { %1108 = vtanh.f32 %v555_v17  ;;  %678 = vadd.xlane.f32.xlu0 %v677_v19  ;;  %v640_v23 = vmul.f32 %v1099_v20, %v1419_v49  ;;  %v1480_v17 = vand.u32 127, %v88_v52 }
 0x229   :  { %1110 = vtanh.f32 %v557_v21  ;;  %v560_v24 = vpop.f32.mrb[12].mxu1 }
 0x22a   :  { %v1101_v25 = vpop.eup %1100  ;;  %v561_v26 = vadd.f32 %v560_v24, %v1401_v34  ;;  %v562_v27 = vpop.f32.mrb[13].mxu1  ;;  %v680_v28 = vadd.f32 %v640_v23, %v639_v22  ;;  %v756_v20 = vadd.s32 4294967280, %v1480_v17  ;;  %v747_v24 = vsub.s32 %v1480_v17, %v1348_v53 }
 0x22b   :  { %v1103_v30 = vpop.eup %1102  ;;  %v563_v31 = vadd.f32 %v562_v27, %v1404_v35  ;;  %v641_v32 = vmul.f32 %v1101_v25, %v1416_v48 }
 0x22c   :  { %1112 = vtanh.f32 %v561_v26  ;;  %681 = vadd.xlane.f32.xlu0 %v680_v28  ;;  %v642_v33 = vmul.f32 %v1103_v30, %v1419_v49  ;;  %v759_v26 = vsub.s32 %v756_v20, %v1348_v53  ;;  %v763_v28 = vadd.s32 4294967272, %v1480_v17 }
 0x22d   :  { %1114 = vtanh.f32 %v563_v31  ;;  %v566_v57 = vpop.f32.mrb[14].mxu1  ;;  %704 = vperm.xlu1 %994, %v701_v29   ;;  %v770_v31 = vadd.s32 4294967264, %v1480_v17 }
 0x22e   :  { %v1105_v58 = vpop.eup %1104  ;;  %v567_v36 = vadd.f32 %v566_v57, %v1401_v34  ;;  %v568_v37 = vpop.f32.mrb[15].mxu1  ;;  %v683_v38 = vadd.f32 %v642_v33, %v641_v32  ;;  %v766_v57 = vsub.s32 %v763_v28, %v1348_v53 }
 0x22f   :  { %v1107_v39 = vpop.eup %1106  ;;  %v569_v40 = vadd.f32 %v568_v37, %v1404_v35  ;;  %v643_v41 = vmul.f32 %v1105_v58, %v1416_v48 }
 0x230   :  { %1116 = vtanh.f32 %v567_v36  ;;  %684 = vadd.xlane.f32.xlu0 %v683_v38  ;;  %v644_v42 = vmul.f32 %v1107_v39, %v1419_v49  ;;  %v777_v36 = vadd.s32 4294967256, %v1480_v17  ;;  %v773_v39 = vsub.s32 %v770_v31, %v1348_v53 }
 0x231   :  { %1118 = vtanh.f32 %v569_v40  ;;  %v572_v1 = vpop.f32.mrb[16].mxu1 }
 0x232   :  { %v1109_v43 = vpop.eup %1108  ;;  %v573_v44 = vadd.f32 %v572_v1, %v1401_v34  ;;  %v574_v45 = vpop.f32.mrb[17].mxu1  ;;  %v686_v46 = vadd.f32 %v644_v42, %v643_v41  ;;  %v784_v41 = vadd.s32 4294967248, %v1480_v17 }
 0x233   :  { %v1111_v47 = vpop.eup %1110  ;;  %v575_v50 = vadd.f32 %v574_v45, %v1404_v35  ;;  %v645_v51 = vmul.f32 %v1109_v43, %v1416_v48  ;;  %v780_v43 = vsub.s32 %v777_v36, %v1348_v53 }
 0x234   :  { %1120 = vtanh.f32 %v573_v44  ;;  %v646_v55 = vmul.f32 %v1111_v47, %v1419_v49  ;;  %v791_v47 = vadd.s32 4294967240, %v1480_v17 }
 0x235   :  { %1122 = vtanh.f32 %v575_v50 }
 0x236   :  { %v1113_v59 = vpop.eup %1112  ;;  %v689_v60 = vadd.f32 %v646_v55, %v645_v51  ;;  %v798_v55 = vadd.s32 4294967232, %v1480_v17 }
 0x237   :  { %v1115_v61 = vpop.eup %1114  ;;  %v647_v62 = vmul.f32 %v1113_v59, %v1416_v48 }
 0x238   :  { %690 = vadd.xlane.f32.xlu0 %v689_v60  ;;  %v648_v63 = vmul.f32 %v1115_v61, %v1419_v49  ;;  %v805_v60 = vadd.s32 4294967224, %v1480_v17  ;;  %v812_v61 = vadd.s32 4294967216, %v1480_v17 }
 0x23a   :  { %v1117_v34 = vpop.eup %1116  ;;  %v692_v0 = vadd.f32 %v648_v63, %v647_v62  ;;  %v794_v63 = vsub.s32 %v791_v47, %v1348_v53 }
 0x23b   :  { %v1119_v2 = vpop.eup %1118  ;;  %v649_v56 = vmul.f32 %v1117_v34, %v1416_v48 }
 0x23c   :  { %693 = vadd.xlane.f32.xlu0 %v692_v0  ;;  %v650_v35 = vmul.f32 %v1119_v2, %v1419_v49  ;;  %v801_v2 = vsub.s32 %v798_v55, %v1348_v53 }
 0x23e   :  { %v1121_v3 = vpop.eup %1120  ;;  %v695_v4 = vadd.f32 %v650_v35, %v649_v56 }
 0x23f   :  { %v1123_v5 = vpop.eup %1122  ;;  %v651_v6 = vmul.f32 %v1121_v3, %v1416_v48  ;;  %v808_v3 = vsub.s32 %v805_v60, %v1348_v53 }
 0x240   :  { %696 = vadd.xlane.f32.xlu0 %v695_v4  ;;  %v652_v7 = vmul.f32 %v1123_v5, %v1419_v49  ;;  %v749_v49 = vadd.s32 4294967288, %v1480_v17  ;;  %v819_v5 = vadd.s32 4294967208, %v1480_v17 }
 0x242   :  { %v698_v8 = vadd.f32 %v652_v7, %v651_v6  ;;  %v752_v52 = vsub.s32 %v749_v49, %v1348_v53  ;;  %v815_v7 = vsub.s32 %v812_v61, %v1348_v53 }
 0x244   :  { %699 = vadd.xlane.f32.xlu0 %v698_v8 }
 0x251   :  { %687 = vadd.xlane.f32.xlu1 %v686_v46  ;;  %v787_v46 = vsub.s32 %v784_v41, %v1348_v53 }
 0x295   :  { %v655_v9 = vpop.xlane.xlu0 %654 }
 0x299   :  { %v658_v10 = vpop.xlane.xlu0 %657 }
 0x29d   :  { %v661_v11 = vpop.xlane.xlu1 %660 }
 0x2a1   :  { %v664_v14 = vpop.xlane.xlu1 %663 }
 0x2a5   :  { %v667_v12 = vpop.xlane.xlu0 %666 }
 0x2a9   :  { %v670_v15 = vpop.xlane.xlu1 %669 }
 0x2ad   :  { %v673_v13 = vpop.xlane.xlu0 %672  ;;  %v705_v18 = vpop.permute.xlu1 %704 }
 0x2ae   :  { %v1483_v48 = vrot.slane %v705_v18, %v1351_v54  ;;  %v822_v18 = vsub.s32 %v819_v5, %v1348_v53 }
 0x2b0   :  { %v711_v22 = vadd.f32 %v1483_v48, %v655_v9  ;;  %v712_v23 = vadd.f32 %v1483_v48, %v658_v10  ;;  %v713_v25 = vadd.f32 %v1483_v48, %v661_v11  ;;  %v714_v32 = vadd.f32 %v1483_v48, %v664_v14 }
 0x2b1   :  { %v676_v16 = vpop.xlane.xlu0 %675  ;;  %v715_v37 = vadd.f32 %v1483_v48, %v667_v12  ;;  %v716_v42 = vadd.f32 %v1483_v48, %v670_v15  ;;  %v717_v51 = vadd.f32 %v1483_v48, %v673_v13  ;;  %v826_v9 = vadd.s32 4294967200, %v1480_v17 }
 0x2b2   :  { %v748_v54 = vrot.slane %v711_v22, %v747_v24  ;;  %v753_v27 = vrot.slane %v712_v23, %v752_v52  ;;  %v760_v30 = vrot.slane %v713_v25, %v759_v26  ;;  %v767_v40 = vrot.slane %v714_v32, %v766_v57 }
 0x2b3   :  { %v774_v44 = vrot.slane %v715_v37, %v773_v39  ;;  %v781_v59 = vrot.slane %v716_v42, %v780_v43  ;;  %v718_v34 = vadd.f32 %v1483_v48, %v676_v16  ;;  %v788_v0 = vrot.slane %v717_v51, %v787_v46 }
 0x2b4   :  { %v755_v33 = vsel %vm754_vm1, %v753_v27, %v748_v54  ;;  %v833_v11 = vadd.s32 4294967192, %v1480_v17  ;;  %v840_v12 = vadd.s32 4294967184, %v1480_v17  ;;  %v847_v14 = vadd.s32 4294967176, %v1480_v17 }
 0x2b5   :  { %v679_v19 = vpop.xlane.xlu0 %678  ;;  %v762_v38 = vsel %vm761_vm2, %v760_v30, %v755_v33  ;;  %v795_v10 = vrot.slane %v718_v34, %v794_v63  ;;  %v829_v49 = vsub.s32 %v826_v9, %v1348_v53 }
 0x2b6   :  { %v769_v1 = vsel %vm768_vm3, %v767_v40, %v762_v38  ;;  %v719_v56 = vadd.f32 %v1483_v48, %v679_v19  ;;  %v836_v23 = vsub.s32 %v833_v11, %v1348_v53  ;;  %v843_v52 = vsub.s32 %v840_v12, %v1348_v53 }
 0x2b7   :  { %v776_v50 = vsel %vm775_vm4, %v774_v44, %v769_v1  ;;  %v850_v54 = vsub.s32 %v847_v14, %v1348_v53 }
 0x2b8   :  { %v783_v62 = vsel %vm782_vm5, %v781_v59, %v776_v50  ;;  %v802_v13 = vrot.slane %v719_v56, %v801_v2 }
 0x2b9   :  { %v682_v21 = vpop.xlane.xlu0 %681  ;;  %v790_v6 = vsel %vm789_vm6, %v788_v0, %v783_v62 }
 0x2ba   :  { %v720_v4 = vadd.f32 %v1483_v48, %v682_v21  ;;  %v797_v15 = vsel %vm796_vm7, %v795_v10, %v790_v6 }
 0x2bb   :  { %v804_v25 = vsel %vm803_vm8, %v802_v13, %v797_v15 }
 0x2bc   :  { %v809_v16 = vrot.slane %v720_v4, %v808_v3 }
 0x2bd   :  { %v685_v29 = vpop.xlane.xlu0 %684 }
 0x2be   :  { %v721_v8 = vadd.f32 %v1483_v48, %v685_v29  ;;  %v811_v27 = vsel %vm810_vm9, %v809_v16, %v804_v25 }
 0x2c0   :  { %v816_v19 = vrot.slane %v721_v8, %v815_v7 }
 0x2c2   :  { %v818_v30 = vsel %vm817_vm10, %v816_v19, %v811_v27 }
 0x2c5   :  { %v691_v58 = vpop.xlane.xlu0 %690 }
 0x2c6   :  { %v723_v20 = vadd.f32 %v1483_v48, %v691_v58 }
 0x2c8   :  { %v830_v31 = vrot.slane %v723_v20, %v829_v49 }
 0x2c9   :  { %v694_v45 = vpop.xlane.xlu0 %693 }
 0x2ca   :  { %v724_v24 = vadd.f32 %v1483_v48, %v694_v45 }
 0x2cc   :  { %v837_v32 = vrot.slane %v724_v24, %v836_v23 }
 0x2cd   :  { %v697_v35 = vpop.xlane.xlu0 %696 }
 0x2ce   :  { %v725_v26 = vadd.f32 %v1483_v48, %v697_v35 }
 0x2d0   :  { %v844_v57 = vrot.slane %v725_v26, %v843_v52 }
 0x2d1   :  { %v700_v21 = vpop.xlane.xlu0 %699 }
 0x2d2   :  { %v726_v28 = vadd.f32 %v1483_v48, %v700_v21 }
 0x2d4   :  { %v851_v53 = vrot.slane %v726_v28, %v850_v54 }
 0x2de   :  { %v688_v22 = vpop.xlane.xlu1 %687 }
 0x2df   :  { %v722_v17 = vadd.f32 %v1483_v48, %v688_v22 }
 0x2e1   :  { %v823_v29 = vrot.slane %v722_v17, %v822_v18 }
 0x2e3   :  { %v825_v33 = vsel %vm824_vm11, %v823_v29, %v818_v30 }
 0x2e4   :  { %v832_v58 = vsel %vm831_vm12, %v830_v31, %v825_v33 }
 0x2e5   :  { %v839_v36 = vsel %vm838_vm13, %v837_v32, %v832_v58 }
 0x2e6   :  { %v846_v37 = vsel %vm845_vm14, %v844_v57, %v839_v36 }
 0x2e7   :  { %v853_v38 = vsel %vm852_vm15, %v851_v53, %v846_v37 }
 0x2e8   :  { %855 = vst [vmem:[#allocation9] sm:$0x1] %v853_v38 }
 0x2e9   :  { %1201 = shalt.err (!%p1198_p0)
}
 0x2ea   :  { %s1202_s24 = scalar_lea.hbm %s1555_s7, 16 }
 0x2eb   :  { %p1203_p1 = scmp.ne.s32.totalorder %s1555_s7, %s1202_s24  ;;  %p1206_p2 = scmp.lt.u32.totalorder %s1202_s24, %s1555_s7 }
 0x2ed   :  { %p1208_p3 = pnand %p1206_p2, %p1203_p1 }
 0x2ef   :  { %1211 = shalt.err (!%p1208_p3)
}
 0x2f0   :  { %865 = dma.vmem_to_hbm [thread:$0]  %s863_s20, 16, %s1555_s7, [#allocation5]  }
 0x2f1   :  { %1216 = dma.done.wait [#allocation5], 16  }
 0x2f2   :  { %1217 = vsyncadd [#allocation5], 4294967280 }
 0x2f3   :  { %869 = vsyncpa [#allocation4], 1 }
 0x2f4   :  { %870 = vsyncpa [#allocation7], 1 }
 0x2f5   :  { %871 = vsyncpa [#allocation5], 1 }

</bundles_post_ra>
